<compile_context>
chip_gen: v6e
topology: v6e:2x2x1
jax: 0.10.0
libtpu: 0.0.40
codegen_flags: <defaults>
</compile_context>

<pallas_src>
import jax
import jax.numpy as jnp
from jax.experimental import pallas as pl
from jax.experimental.pallas import tpu as pltpu


def _affine_norm_kernel(x_ref, scale_ref, bias_ref, o_ref):
    # x_ref / o_ref       : (tile_rows, tile_lanes) slab in VMEM
    # scale_ref / bias_ref: (tile_rows, 1) per-row affine params (f32),
    #                       broadcast across the lane dimension.
    o_ref[...] = (x_ref[...] * scale_ref[...] + bias_ref[...]).astype(o_ref.dtype)


def normalization(img, mean, std, *, target_block_bytes=4 << 20):
    """(img - mean[..., None, None]) / std[..., None, None].

    Accepts NCHW (4-D) or CHW (3-D) images, matching the PyTorch module's
    broadcasting of mean/std shaped (-1, 1, 1).
    """
    orig_shape = img.shape
    img4 = img[None] if img.ndim == 3 else img
    N, C, H, W = img4.shape
    assert mean.shape == (C,) and std.shape == (C,)

    R = N * C          # one slab row per (n, c) plane
    L = H * W          # lane-dense spatial extent
    itemsize = jnp.dtype(img.dtype).itemsize

    # Affine folding: (x - m) / s == x * (1/s) + (-m/s). Precompute per
    # channel in f32, replicate per row (row = n*C + c  ->  channel = row % C).
    # TODO(synk): std == 0 divides to inf here, matching PyTorch's semantics.
    scale_c = (1.0 / std).astype(jnp.float32)
    bias_c = (-mean / std).astype(jnp.float32)
    scale = jnp.tile(scale_c, N).reshape(R, 1)
    bias = jnp.tile(bias_c, N).reshape(R, 1)

    x2d = img4.reshape(R, L)

    # Lane (last-dim) tile: full L if a row fits the budget, otherwise a
    # 128-aligned chunk (keeps unmasked full-width vector stores).
    if L * itemsize <= target_block_bytes:
        tile_l = L
    else:
        tile_l = max(128, (target_block_bytes // itemsize // 128) * 128)
        tile_l = min(tile_l, L)

    # Row (sublane) tile: as many rows of tile_l lanes as fit the budget,
    # a multiple of 8 (or the full extent R).
    bytes_per_row = tile_l * itemsize
    max_rows = max(1, target_block_bytes // bytes_per_row)
    if R <= max_rows:
        tile_r = R                                # full extent
    else:
        tile_r = max(8, (max_rows // 8) * 8)      # multiple of 8

    grid = (pl.cdiv(R, tile_r), pl.cdiv(L, tile_l))

    out2d = pl.pallas_call(
        _affine_norm_kernel,
        out_shape=jax.ShapeDtypeStruct((R, L), img.dtype),
        grid=grid,
        in_specs=[
            pl.BlockSpec((tile_r, tile_l), lambda i, j: (i, j)),  # image slab
            pl.BlockSpec((tile_r, 1), lambda i, j: (i, 0)),       # per-row scale
            pl.BlockSpec((tile_r, 1), lambda i, j: (i, 0)),       # per-row bias
        ],
        out_specs=pl.BlockSpec((tile_r, tile_l), lambda i, j: (i, j)),
        compiler_params=pltpu.CompilerParams(
            dimension_semantics=("parallel", "parallel")),
        cost_estimate=pl.CostEstimate(
            flops=2 * R * L,
            transcendentals=0,
            bytes_accessed=2 * R * L * itemsize + 2 * R * 4,
        ),
    )(x2d, scale, bias)

    return out2d.reshape(orig_shape)


if __name__ == "__main__":
    # Deterministic "parameters" (the module's __init__ just stores mean/std).
    C = 4
    mean = jnp.array([0.485, 0.456, 0.406, 0.5], dtype=jnp.float32)
    std = jnp.array([0.229, 0.224, 0.225, 0.25], dtype=jnp.float32)

    # Small deterministic input, NCHW.
    key = jax.random.PRNGKey(0)
    img = jax.random.uniform(key, (2, C, 16, 16), dtype=jnp.float32)

    out = normalization(img, mean, std)
    out = jax.block_until_ready(out)

    # Reference check against plain JAX broadcasting semantics.
    ref = (img - mean[None, :, None, None]) / std[None, :, None, None]
    assert out.shape == img.shape and out.dtype == img.dtype
    assert jnp.allclose(out, ref, atol=1e-5, rtol=1e-5)

    print("KERNEL_OK")
</pallas_src>

<mosaic_0001>
module attributes {stable_mosaic.version = 11 : i64} {
  func.func @_affine_norm_kernel(%arg0: i32, %arg1: i32, %arg2: memref<8x256xf32, #tpu.memory_space<vmem>>, %arg3: memref<8x1xf32, #tpu.memory_space<vmem>>, %arg4: memref<8x1xf32, #tpu.memory_space<vmem>>, %arg5: memref<8x256xf32, #tpu.memory_space<vmem>>) attributes {dimension_semantics = [#tpu.dimension_semantics<parallel>, #tpu.dimension_semantics<parallel>], iteration_bounds = array<i64: 1, 1>, scalar_prefetch = 0 : i64, scratch_operands = 0 : i64, tpu.core_type = #tpu.core_type<tc>, window_params = [{transform_indices = @transform_0, window_bounds = array<i64: 8, 256>}, {transform_indices = @transform_1, window_bounds = array<i64: 8, 1>}, {transform_indices = @transform_2, window_bounds = array<i64: 8, 1>}, {transform_indices = @transform_3, window_bounds = array<i64: 8, 256>}]} {
    %c0 = arith.constant 0 : index
    %c0_0 = arith.constant 0 : index
    %0 = vector.load %arg2[%c0, %c0_0] : memref<8x256xf32, #tpu.memory_space<vmem>>, vector<8x256xf32>
    %c0_1 = arith.constant 0 : index
    %c0_2 = arith.constant 0 : index
    %1 = vector.load %arg3[%c0_1, %c0_2] : memref<8x1xf32, #tpu.memory_space<vmem>>, vector<8x1xf32>
    %2 = vector.broadcast %1 : vector<8x1xf32> to vector<8x256xf32>
    %3 = arith.mulf %0, %2 : vector<8x256xf32>
    %c0_3 = arith.constant 0 : index
    %c0_4 = arith.constant 0 : index
    %4 = vector.load %arg4[%c0_3, %c0_4] : memref<8x1xf32, #tpu.memory_space<vmem>>, vector<8x1xf32>
    %5 = vector.broadcast %4 : vector<8x1xf32> to vector<8x256xf32>
    %6 = arith.addf %3, %5 : vector<8x256xf32>
    %c0_5 = arith.constant 0 : index
    %c0_6 = arith.constant 0 : index
    %7 = vector.load %arg5[%c0_5, %c0_6] : memref<8x256xf32, #tpu.memory_space<vmem>>, vector<8x256xf32>
    tpu.vector_store %arg5[%c0_5, %c0_6], %6 {strides = array<i32>} : memref<8x256xf32, #tpu.memory_space<vmem>>, vector<8x256xf32>,
    return
  }
  func.func @transform_0(%arg0: i32, %arg1: i32) -> (i32, i32) {
    %c0_i32 = arith.constant 0 : i32
    return %arg0, %arg1 : i32, i32
  }
  func.func @transform_1(%arg0: i32, %arg1: i32) -> (i32, i32) {
    %c0_i32 = arith.constant 0 : i32
    %c0_i32_0 = arith.constant 0 : i32
    return %arg0, %c0_i32 : i32, i32
  }
  func.func @transform_2(%arg0: i32, %arg1: i32) -> (i32, i32) {
    %c0_i32 = arith.constant 0 : i32
    %c0_i32_0 = arith.constant 0 : i32
    return %arg0, %c0_i32 : i32, i32
  }
  func.func @transform_3(%arg0: i32, %arg1: i32) -> (i32, i32) {
    %c0_i32 = arith.constant 0 : i32
    return %arg0, %arg1 : i32, i32
  }
}

</mosaic_0001>

<bundles_post_ra>
// kernel: tpu_custom_call.1
= control target key start
LH: loop header
LB: loop body
LE: loop exit
PB: predicated region body
PF: predicated region fallthrough
CT: control target
= control target key end

     0   :  { %v74_v1 = vmov 0   ;;  %s111_s0 = inlined_call_operand.vmem [shape: f32[8,256], index: 0, kind: input, shape index: {}]   ;;  %s112_s1 = inlined_call_operand.vmem [shape: f32[8,1], index: 1, kind: input, shape index: {}]   ;;  %s113_s2 = inlined_call_operand.vmem [shape: f32[8,1], index: 2, kind: input, shape index: {}]   ;;  %s114_s3 = inlined_call_operand.hbm [shape: f32[8,256], index: 3, kind: output, shape index: {}]  }
   0x1   :  { %v17_v0 = vld [vmem:[%s112_s1] sm:$0xff]  ;;  %51 = vset.pattern.permute.xlu0 %v74_v1 }
   0x2   :  { %8 = vsyncpa [#allocation3], 0  ;;  %20 = vperm.xlu0 %51, %v17_v0   ;;  %v25_v2 = vld [vmem:[%s113_s2] sm:$0xff]  ;;  %v16_v5 = vld [vmem:[%s111_s0 + $0x8] sm:$0xff]  ;;  %s75_s20 = smov [#allocation2]  }
   0x3   :  { %v15_v4 = vld [vmem:[%s111_s0] sm:$0xff]  ;;  %s41_s1 = sshll.u32 %s75_s20, 4  ;;  %s42_s1 = int_to_ptr.vmem [resolvable:$true] %s41_s1 }
   0x4   :  { %s52_s2 = scalar_lea.vmem %s42_s1, 256  ;;  %p57_p1 = scmp.lt.s32.totalorder %s42_s1, %s42_s1 }
   0x5   :  { %p53_p0 = scmp.ne.s32.totalorder %s42_s1, %s52_s2  ;;  %p58_p2 = scmp.lt.s32.totalorder %s52_s2, %s52_s2 }
   0x6   :  { %28 = vperm.xlu0 %51, %v25_v2  }
   0x7   :  { %p59_p3 = por %p58_p2, %p57_p1 }
   0x9   :  { %p60_p4 = pnand %p59_p3, %p53_p0 }
  0x7d   :  { %v21_v3 = vpop.permute.xlu0 %20 }
  0x7e   :  { %v23_v6 = vmul.f32 %v21_v3, %v15_v4  ;;  %v24_v7 = vmul.f32 %v21_v3, %v16_v5 }
  0x81   :  { %v29_v8 = vpop.permute.xlu0 %28 }
  0x82   :  { %v31_v9 = vadd.f32 %v29_v8, %v23_v6  ;;  %v32_v10 = vadd.f32 %v29_v8, %v24_v7 }
  0x84   :  { %33 = vst [vmem:[#allocation2] sm:$0xff] %v31_v9  ;;  %34 = vst [vmem:[#allocation2 + $0x8] sm:$0xff] %v32_v10 }
  0x85   :  { %63 = shalt.err (!%p60_p4)
}
  0x86   :  { %44 = dma.vmem_to_hbm [thread:$0]  %s42_s1, 256, %s114_s3, [#allocation3]  }
  0x87   :  { %72 = dma.done.wait [#allocation3], 256  }
  0x88   :  { %73 = vsyncadd [#allocation3], 4294967040 }
  0x89   :  { %48 = vsyncpa [#allocation3], 1 }

</bundles_post_ra>
